<compile_context>
chip_gen: v7x
topology: tpu7x:2x2x1
jax: 0.10.0
libtpu: 0.0.40
codegen_flags: <defaults>
</compile_context>

<pallas_src>
import functools
import math

import jax
import jax.numpy as jnp
from jax.experimental import pallas as pl
from jax.experimental.pallas import tpu as pltpu

# Matches torch.full_like(X[:, 0], 1 * math.e ** (-6)) in the reference
# (positive "log prob" filler -- faithfully reproduced from the PyTorch code).
OUT_OF_BOUNDS_LOGP = math.e ** (-6)
LANE = 128
MAX_ROWS_PER_BLOCK = 2048  # 2048 * 128 = 262144 samples / ~3 MiB per block.


def _round_up(x, m):
    return ((x + m - 1) // m) * m


def umm_kernel(params_ref, xy_ref, out_ref, *, n_components):
    # params_ref: SMEM (6*K + 1,) = [lo_x(K), hi_x(K), lo_y(K), hi_y(K),
    #                                p_in(K), p_out(K), C]
    # xy_ref:     VMEM (2, R, 128) -> [0] = x coords, [1] = y coords
    # out_ref:    VMEM (R, 128)    -> per-sample log-likelihood
    K = n_components
    x = xy_ref[0]  # (R, 128)
    y = xy_ref[1]  # (R, 128)

    s = None
    for k in range(K):  # K is small & static -> unrolled
        lo_x = params_ref[0 * K + k]
        hi_x = params_ref[1 * K + k]
        lo_y = params_ref[2 * K + k]
        hi_y = params_ref[3 * K + k]
        p_in = params_ref[4 * K + k]   # exp(log_uniform_k + log_pk_k - C)
        p_out = params_ref[5 * K + k]  # exp(OUT_OF_BOUNDS_LOGP + log_pk_k - C)

        in_bounds = jnp.logical_and(
            jnp.logical_and(x >= lo_x, x <= hi_x),
            jnp.logical_and(y >= lo_y, y <= hi_y))
        term = jnp.where(in_bounds, p_in, p_out)
        s = term if s is None else s + term

    c = params_ref[6 * K]
    # Stabilised logsumexp over components: log(sum_k exp(log_k - C)) + C.
    out_ref[...] = jnp.log(s) + c


def umm_forward(X, weights, centers, log_sizes, *,
                max_rows_per_block=MAX_ROWS_PER_BLOCK):
    """Pallas implementation of UMM.forward. X: (N, 2) -> (N,) float32."""
    N = X.shape[0]
    K = weights.shape[0]

    # ---- Parameter preprocessing (tiny, plain JAX). ----
    weights = weights.astype(jnp.float32)
    centers = centers.astype(jnp.float32)
    log_sizes = log_sizes.astype(jnp.float32)

    log_pk = jax.nn.log_softmax(weights, axis=0)             # (K,)
    sizes = jnp.exp(log_sizes)                               # (K, 2)
    lo = centers - sizes / 2.0                               # (K, 2)
    hi = centers + sizes / 2.0                               # (K, 2)
    log_unif = -jnp.log(sizes[:, 0]) - jnp.log(sizes[:, 1])  # (K,)

    # Fold mixture weight + constant log densities into two probabilities per
    # component, max-stabilised so exp() cannot overflow.
    log_in = log_unif + log_pk                                        # (K,)
    log_out = jnp.float32(OUT_OF_BOUNDS_LOGP) + log_pk                # (K,)
    c = jnp.maximum(jnp.max(log_in), jnp.max(log_out))                # scalar
    p_in = jnp.exp(log_in - c)                                        # (K,)
    p_out = jnp.exp(log_out - c)                                      # (K,)

    params = jnp.concatenate(
        [lo[:, 0], hi[:, 0], lo[:, 1], hi[:, 1], p_in, p_out, c[None]],
        axis=0).astype(jnp.float32)                                   # (6K+1,)

    # ---- Input layout: one fused pad+reshape+transpose (single XLA copy). ---
    n_rows = max(1, pl.cdiv(N, LANE))        # pad only to the 128 boundary
    n_pad = n_rows * LANE
    Xf = X.astype(jnp.float32)
    xy = (jnp.pad(Xf, ((0, n_pad - N), (0, 0)))
          .reshape(n_rows, LANE, 2)
          .transpose(2, 0, 1))               # (2, n_rows, 128)

    # ---- Block size: <= max_rows_per_block rows, but aim for >= 8 grid steps
    # so the "parallel" axis can shard across both TensorCores (v7x). --------
    rows_per_block = min(max_rows_per_block,
                         max(8, _round_up(pl.cdiv(n_rows, 8), 8)))
    rows_per_block = min(rows_per_block, n_rows)   # full-extent if tiny
    grid = (pl.cdiv(n_rows, rows_per_block),)      # last block may be ragged

    cost = pl.CostEstimate(
        flops=9 * K * n_rows * LANE,
        transcendentals=n_rows * LANE,
        bytes_accessed=12 * n_rows * LANE)

    out = pl.pallas_call(
        functools.partial(umm_kernel, n_components=K),
        out_shape=jax.ShapeDtypeStruct((n_rows, LANE), jnp.float32),
        grid=grid,
        in_specs=[
            pl.BlockSpec(memory_space=pltpu.MemorySpace.SMEM),      # params
            pl.BlockSpec((2, rows_per_block, LANE), lambda i: (0, i, 0)),
        ],
        out_specs=pl.BlockSpec((rows_per_block, LANE), lambda i: (i, 0)),
        compiler_params=pltpu.CompilerParams(
            dimension_semantics=("parallel",)),
        cost_estimate=cost,
    )(params, xy)

    # Free reshape; the [:N] slice is an identity (elided) when N % 128 == 0.
    return out.reshape(-1)[:N]


def umm_forward_ref(X, weights, centers, log_sizes):
    """Pure-JAX reference mirroring the PyTorch forward, for verification."""
    log_pk = jax.nn.log_softmax(weights, axis=0)
    sizes = jnp.exp(log_sizes)
    lo = centers - sizes / 2.0
    hi = centers + sizes / 2.0
    x = X[:, 0][:, None]
    y = X[:, 1][:, None]
    in_b = ((x >= lo[None, :, 0]) & (x <= hi[None, :, 0]) &
            (y >= lo[None, :, 1]) & (y <= hi[None, :, 1]))
    log_unif = -jnp.log(sizes[:, 0]) - jnp.log(sizes[:, 1])
    logs = jnp.where(in_b, log_unif[None, :],
                     jnp.float32(OUT_OF_BOUNDS_LOGP)) + log_pk[None, :]
    return jax.scipy.special.logsumexp(logs, axis=1)


if __name__ == "__main__":
    key = jax.random.PRNGKey(0)
    k_w, k_c, k_s, k_x = jax.random.split(key, 4)

    n_components = 4

    # Deterministic parameter init matching the module's __init__ shapes.
    weights = jax.random.normal(k_w, (n_components,), dtype=jnp.float32)
    centers = jax.random.normal(k_c, (n_components, 2), dtype=jnp.float32)
    log_sizes = jnp.log(
        jnp.ones((n_components, 2), dtype=jnp.float32)
        + jax.random.uniform(k_s, (n_components, 2), dtype=jnp.float32) * 0.2)

    umm = jax.jit(umm_forward)

    # Case 1: tiny single-block input (ragged lanes, N < 128).
    X1 = jax.random.normal(k_x, (64, 2), dtype=jnp.float32)
    out1 = jax.block_until_ready(umm(X1, weights, centers, log_sizes))
    ref1 = umm_forward_ref(X1, weights, centers, log_sizes)
    assert out1.shape == (64,)
    assert jnp.allclose(out1, ref1, atol=1e-5, rtol=1e-5)

    # Case 2: N multiple of 128 (pad/slice elided), ragged last grid block.
    X2 = jax.random.normal(jax.random.fold_in(k_x, 1), (2560, 2),
                           dtype=jnp.float32)
    out2 = jax.block_until_ready(umm(X2, weights, centers, log_sizes))
    ref2 = umm_forward_ref(X2, weights, centers, log_sizes)
    assert out2.shape == (2560,)
    assert jnp.allclose(out2, ref2, atol=1e-5, rtol=1e-5)

    # Case 3: ragged N, multiple grid steps.
    X3 = jax.random.normal(jax.random.fold_in(k_x, 2), (3000, 2),
                           dtype=jnp.float32)
    out3 = jax.block_until_ready(umm(X3, weights, centers, log_sizes))
    ref3 = umm_forward_ref(X3, weights, centers, log_sizes)
    assert out3.shape == (3000,)
    assert jnp.allclose(out3, ref3, atol=1e-5, rtol=1e-5)

    print("KERNEL_OK")
</pallas_src>

<mosaic_0001>
module attributes {stable_mosaic.version = 11 : i64} {
  func.func @umm_kernel(%arg0: i32, %arg1: memref<25xf32, #tpu.memory_space<smem>>, %arg2: memref<2x1x128xf32, #tpu.memory_space<vmem>>, %arg3: memref<1x128xf32, #tpu.memory_space<vmem>>) attributes {dimension_semantics = [#tpu.dimension_semantics<parallel>], iteration_bounds = array<i64: 1>, scalar_prefetch = 0 : i64, scratch_operands = 0 : i64, tpu.core_type = #tpu.core_type<tc>, window_params = [{transform_indices = @transform_0, window_bounds = array<i64: 25>}, {transform_indices = @transform_1, window_bounds = array<i64: 2, 1, 128>}, {transform_indices = @transform_2, window_bounds = array<i64: 1, 128>}]} {
    %c0 = arith.constant 0 : index
    %c0_0 = arith.constant 0 : index
    %c0_1 = arith.constant 0 : index
    %0 = vector.load %arg2[%c0, %c0_0, %c0_1] : memref<2x1x128xf32, #tpu.memory_space<vmem>>, vector<1x1x128xf32>
    %1 = vector.shape_cast %0 : vector<1x1x128xf32> to vector<1x128xf32>
    %c1 = arith.constant 1 : index
    %c0_2 = arith.constant 0 : index
    %c0_3 = arith.constant 0 : index
    %2 = vector.load %arg2[%c1, %c0_2, %c0_3] : memref<2x1x128xf32, #tpu.memory_space<vmem>>, vector<1x1x128xf32>
    %3 = vector.shape_cast %2 : vector<1x1x128xf32> to vector<1x128xf32>
    %c0_4 = arith.constant 0 : index
    %4 = memref.load %arg1[%c0_4] : memref<25xf32, #tpu.memory_space<smem>>
    %c4 = arith.constant 4 : index
    %5 = memref.load %arg1[%c4] : memref<25xf32, #tpu.memory_space<smem>>
    %c8 = arith.constant 8 : index
    %6 = memref.load %arg1[%c8] : memref<25xf32, #tpu.memory_space<smem>>
    %c12 = arith.constant 12 : index
    %7 = memref.load %arg1[%c12] : memref<25xf32, #tpu.memory_space<smem>>
    %c16 = arith.constant 16 : index
    %8 = memref.load %arg1[%c16] : memref<25xf32, #tpu.memory_space<smem>>
    %c20 = arith.constant 20 : index
    %9 = memref.load %arg1[%c20] : memref<25xf32, #tpu.memory_space<smem>>
    %10 = vector.broadcast %4 : f32 to vector<1x128xf32>
    %11 = arith.cmpf oge, %1, %10 : vector<1x128xf32>
    %12 = vector.broadcast %5 : f32 to vector<1x128xf32>
    %13 = arith.cmpf ole, %1, %12 : vector<1x128xf32>
    %14 = arith.andi %11, %13 : vector<1x128xi1>
    %15 = vector.broadcast %6 : f32 to vector<1x128xf32>
    %16 = arith.cmpf oge, %3, %15 : vector<1x128xf32>
    %17 = vector.broadcast %7 : f32 to vector<1x128xf32>
    %18 = arith.cmpf ole, %3, %17 : vector<1x128xf32>
    %19 = arith.andi %16, %18 : vector<1x128xi1>
    %20 = arith.andi %14, %19 : vector<1x128xi1>
    %21 = vector.broadcast %8 : f32 to vector<1x128xf32>
    %22 = vector.broadcast %9 : f32 to vector<1x128xf32>
    %23 = arith.select %20, %21, %22 : vector<1x128xi1>, vector<1x128xf32>
    %c1_5 = arith.constant 1 : index
    %24 = memref.load %arg1[%c1_5] : memref<25xf32, #tpu.memory_space<smem>>
    %c5 = arith.constant 5 : index
    %25 = memref.load %arg1[%c5] : memref<25xf32, #tpu.memory_space<smem>>
    %c9 = arith.constant 9 : index
    %26 = memref.load %arg1[%c9] : memref<25xf32, #tpu.memory_space<smem>>
    %c13 = arith.constant 13 : index
    %27 = memref.load %arg1[%c13] : memref<25xf32, #tpu.memory_space<smem>>
    %c17 = arith.constant 17 : index
    %28 = memref.load %arg1[%c17] : memref<25xf32, #tpu.memory_space<smem>>
    %c21 = arith.constant 21 : index
    %29 = memref.load %arg1[%c21] : memref<25xf32, #tpu.memory_space<smem>>
    %30 = vector.broadcast %24 : f32 to vector<1x128xf32>
    %31 = arith.cmpf oge, %1, %30 : vector<1x128xf32>
    %32 = vector.broadcast %25 : f32 to vector<1x128xf32>
    %33 = arith.cmpf ole, %1, %32 : vector<1x128xf32>
    %34 = arith.andi %31, %33 : vector<1x128xi1>
    %35 = vector.broadcast %26 : f32 to vector<1x128xf32>
    %36 = arith.cmpf oge, %3, %35 : vector<1x128xf32>
    %37 = vector.broadcast %27 : f32 to vector<1x128xf32>
    %38 = arith.cmpf ole, %3, %37 : vector<1x128xf32>
    %39 = arith.andi %36, %38 : vector<1x128xi1>
    %40 = arith.andi %34, %39 : vector<1x128xi1>
    %41 = vector.broadcast %28 : f32 to vector<1x128xf32>
    %42 = vector.broadcast %29 : f32 to vector<1x128xf32>
    %43 = arith.select %40, %41, %42 : vector<1x128xi1>, vector<1x128xf32>
    %44 = arith.addf %23, %43 : vector<1x128xf32>
    %c2 = arith.constant 2 : index
    %45 = memref.load %arg1[%c2] : memref<25xf32, #tpu.memory_space<smem>>
    %c6 = arith.constant 6 : index
    %46 = memref.load %arg1[%c6] : memref<25xf32, #tpu.memory_space<smem>>
    %c10 = arith.constant 10 : index
    %47 = memref.load %arg1[%c10] : memref<25xf32, #tpu.memory_space<smem>>
    %c14 = arith.constant 14 : index
    %48 = memref.load %arg1[%c14] : memref<25xf32, #tpu.memory_space<smem>>
    %c18 = arith.constant 18 : index
    %49 = memref.load %arg1[%c18] : memref<25xf32, #tpu.memory_space<smem>>
    %c22 = arith.constant 22 : index
    %50 = memref.load %arg1[%c22] : memref<25xf32, #tpu.memory_space<smem>>
    %51 = vector.broadcast %45 : f32 to vector<1x128xf32>
    %52 = arith.cmpf oge, %1, %51 : vector<1x128xf32>
    %53 = vector.broadcast %46 : f32 to vector<1x128xf32>
    %54 = arith.cmpf ole, %1, %53 : vector<1x128xf32>
    %55 = arith.andi %52, %54 : vector<1x128xi1>
    %56 = vector.broadcast %47 : f32 to vector<1x128xf32>
    %57 = arith.cmpf oge, %3, %56 : vector<1x128xf32>
    %58 = vector.broadcast %48 : f32 to vector<1x128xf32>
    %59 = arith.cmpf ole, %3, %58 : vector<1x128xf32>
    %60 = arith.andi %57, %59 : vector<1x128xi1>
    %61 = arith.andi %55, %60 : vector<1x128xi1>
    %62 = vector.broadcast %49 : f32 to vector<1x128xf32>
    %63 = vector.broadcast %50 : f32 to vector<1x128xf32>
    %64 = arith.select %61, %62, %63 : vector<1x128xi1>, vector<1x128xf32>
    %65 = arith.addf %44, %64 : vector<1x128xf32>
    %c3 = arith.constant 3 : index
    %66 = memref.load %arg1[%c3] : memref<25xf32, #tpu.memory_space<smem>>
    %c7 = arith.constant 7 : index
    %67 = memref.load %arg1[%c7] : memref<25xf32, #tpu.memory_space<smem>>
    %c11 = arith.constant 11 : index
    %68 = memref.load %arg1[%c11] : memref<25xf32, #tpu.memory_space<smem>>
    %c15 = arith.constant 15 : index
    %69 = memref.load %arg1[%c15] : memref<25xf32, #tpu.memory_space<smem>>
    %c19 = arith.constant 19 : index
    %70 = memref.load %arg1[%c19] : memref<25xf32, #tpu.memory_space<smem>>
    %c23 = arith.constant 23 : index
    %71 = memref.load %arg1[%c23] : memref<25xf32, #tpu.memory_space<smem>>
    %72 = vector.broadcast %66 : f32 to vector<1x128xf32>
    %73 = arith.cmpf oge, %1, %72 : vector<1x128xf32>
    %74 = vector.broadcast %67 : f32 to vector<1x128xf32>
    %75 = arith.cmpf ole, %1, %74 : vector<1x128xf32>
    %76 = arith.andi %73, %75 : vector<1x128xi1>
    %77 = vector.broadcast %68 : f32 to vector<1x128xf32>
    %78 = arith.cmpf oge, %3, %77 : vector<1x128xf32>
    %79 = vector.broadcast %69 : f32 to vector<1x128xf32>
    %80 = arith.cmpf ole, %3, %79 : vector<1x128xf32>
    %81 = arith.andi %78, %80 : vector<1x128xi1>
    %82 = arith.andi %76, %81 : vector<1x128xi1>
    %83 = vector.broadcast %70 : f32 to vector<1x128xf32>
    %84 = vector.broadcast %71 : f32 to vector<1x128xf32>
    %85 = arith.select %82, %83, %84 : vector<1x128xi1>, vector<1x128xf32>
    %86 = arith.addf %65, %85 : vector<1x128xf32>
    %c24 = arith.constant 24 : index
    %87 = memref.load %arg1[%c24] : memref<25xf32, #tpu.memory_space<smem>>
    %88 = math.log %86 : vector<1x128xf32>
    %89 = vector.broadcast %87 : f32 to vector<1x128xf32>
    %90 = arith.addf %88, %89 : vector<1x128xf32>
    %c0_6 = arith.constant 0 : index
    %c0_7 = arith.constant 0 : index
    %91 = vector.load %arg3[%c0_6, %c0_7] : memref<1x128xf32, #tpu.memory_space<vmem>>, vector<1x128xf32>
    tpu.vector_store %arg3[%c0_6, %c0_7], %90 {strides = array<i32>} : memref<1x128xf32, #tpu.memory_space<vmem>>, vector<1x128xf32>,
    return
  }
  func.func @transform_0(%arg0: i32) -> i32 {
    %c0_i32 = arith.constant 0 : i32
    %c0_i32_0 = arith.constant 0 : i32
    return %c0_i32 : i32
  }
  func.func @transform_1(%arg0: i32) -> (i32, i32, i32) {
    %c0_i32 = arith.constant 0 : i32
    %c0_i32_0 = arith.constant 0 : i32
    %c0_i32_1 = arith.constant 0 : i32
    return %c0_i32, %arg0, %c0_i32_0 : i32, i32, i32
  }
  func.func @transform_2(%arg0: i32) -> (i32, i32) {
    %c0_i32 = arith.constant 0 : i32
    %c0_i32_0 = arith.constant 0 : i32
    return %arg0, %c0_i32 : i32, i32
  }
}

</mosaic_0001>

<bundles_post_ra>
// kernel: umm_forward.1
= control target key start
LH: loop header
LB: loop body
LE: loop exit
PB: predicated region body
PF: predicated region fallthrough
CT: control target
= control target key end

     0   :  { %7 = vsyncpa [#allocation3], 0  ;;  %s322_s0 = inlined_call_operand.vmem [shape: f32[25], index: 0, kind: input, shape index: {}]   ;;  %s323_s1 = inlined_call_operand.vmem [shape: f32[2,1,128], index: 1, kind: input, shape index: {}]   ;;  %s324_s2 = inlined_call_operand.vmem [shape: f32[1,128], index: 2, kind: output, shape index: {}]  }
   0x1   :  { %s14_s11 = sshll.u32 %s322_s0, 4  ;;  %s15_s11 = int_to_ptr.vmem [resolvable:$true] %s14_s11 }
   0x2   :  { %s149_s12 = scalar_lea.vmem %s15_s11, 16  ;;  %p154_p1 = scmp.lt.s32.totalorder %s15_s11, %s15_s11 }
   0x3   :  { %p150_p0 = scmp.ne.s32.totalorder %s15_s11, %s149_s12  ;;  %p155_p2 = scmp.lt.s32.totalorder %s149_s12, %s149_s12 }
   0x5   :  { %p156_p3 = por %p155_p2, %p154_p1 }
   0x7   :  { %p157_p4 = pnand %p156_p3, %p150_p0 }
   0x9   :  { %160 = shalt.err (!%p157_p4)
}
   0xa   :  { %s163_s13 = smov [#allocation2]  }
   0xb   :  { %17 = dma.vmem_to_smem %s15_s11, 16, %s163_s13, [#allocation3]  }
   0xc   :  { %161 = dma.done.wait [#allocation3], 16  }
   0xd   :  { %162 = vsyncadd [#allocation3], 4294967280 }
   0xe   :  { %23 = sfence }
   0xf   :  { %s27_s14 = sld [smem:[#allocation2]]  ;;  %s122_s15 = sld [smem:[#allocation2 + $0x4]]  ;;  %v189_v0 = vld [vmem:[%s323_s1] sm:$0x1]  ;;  %v198_v1 = vld [vmem:[%s323_s1 + $0x1] sm:$0x1] }
  0x10   :  { %s123_s16 = sld [smem:[#allocation2 + $0x8]]  ;;  %s124_s17 = sld [smem:[#allocation2 + $0xc]] }
  0x11   :  { %s182_s18 = sld [smem:[#allocation2 + $0x10]]  ;;  %s184_s0 = sld [smem:[#allocation2 + $0x14]] }
  0x12   :  { %s127_s19 = sld [smem:[#allocation2 + $0x1]]  ;;  %s191_s22 = sld [smem:[#allocation2 + $0x5]] }
  0x13   :  { %s193_s23 = sld [smem:[#allocation2 + $0x9]]  ;;  %s200_s26 = sld [smem:[#allocation2 + $0xd]] }
  0x14   :  { %s202_s27 = sld [smem:[#allocation2 + $0x11]]  ;;  %s204_s28 = sld [smem:[#allocation2 + $0x15]] }
  0x15   :  { %v33_v2 = vstv %s27_s14  ;;  %s206_s29 = sld [smem:[#allocation2 + $0x2]]  ;;  %v35_v4 = vstv %s122_s15  ;;  %s213_s1 = sld [smem:[#allocation2 + $0x6]] }
  0x16   :  { %vm209_vm0 = vcmp.ge.f32.partialorder %v189_v0, %v33_v2  ;;  %v38_v5 = vstv %s123_s16  ;;  %s215_s30 = sld [smem:[#allocation2 + $0xa]]  ;;  %vm218_vm1 = vcmp.le.f32.partialorder %v189_v0, %v35_v4  ;;  %v40_v8 = vstv %s124_s17  ;;  %s227_s3 = sld [smem:[#allocation2 + $0xe]] }
  0x17   :  { %vm223_vm2 = vcmp.ge.f32.partialorder %v198_v1, %v38_v5  ;;  %s229_s4 = sld [smem:[#allocation2 + $0x12]]  ;;  %vm37_vm3 = vmand %vm209_vm0, %vm218_vm1  ;;  %vm41_vm4 = vcmp.le.f32.partialorder %v198_v1, %v40_v8  ;;  %v44_v9 = vstv %s182_s18  ;;  %s237_s5 = sld [smem:[#allocation2 + $0x16]]  ;;  %v45_v11 = vstv %s184_s0 }
  0x18   :  { %v53_v10 = vstv %s127_s19  ;;  %s239_s6 = sld [smem:[#allocation2 + $0x3]]  ;;  %vm42_vm5 = vmand %vm223_vm2, %vm41_vm4  ;;  %v55_v13 = vstv %s191_s22  ;;  %s251_s7 = sld [smem:[#allocation2 + $0x7]] }
  0x19   :  { %vm245_vm6 = vcmp.ge.f32.partialorder %v189_v0, %v53_v10  ;;  %v58_v14 = vstv %s193_s23  ;;  %s253_s8 = sld [smem:[#allocation2 + $0xb]]  ;;  %vm43_vm7 = vmand %vm37_vm3, %vm42_vm5  ;;  %vm256_vm8 = vcmp.le.f32.partialorder %v189_v0, %v55_v13  ;;  %v60_v17 = vstv %s200_s26  ;;  %s266_s9 = sld [smem:[#allocation2 + $0xf]] }
  0x1a   :  { %vm261_vm9 = vcmp.ge.f32.partialorder %v198_v1, %v58_v14  ;;  %s268_s10 = sld [smem:[#allocation2 + $0x13]]  ;;  %vm57_vm10 = vmand %vm245_vm6, %vm256_vm8  ;;  %vm61_vm11 = vcmp.le.f32.partialorder %v198_v1, %v60_v17  ;;  %v64_v18 = vstv %s202_s27  ;;  %v65_v19 = vstv %s204_s28  ;;  %s278_s11 = sld [smem:[#allocation2 + $0x17]] }
  0x1b   :  { %v74_v20 = vstv %s206_s29  ;;  %v46_v21 = vsel %vm43_vm7, %v44_v9, %v45_v11  ;;  %vm62_vm12 = vmand %vm261_vm9, %vm61_vm11  ;;  %v76_v23 = vstv %s213_s1  ;;  %s145_s12 = sld [smem:[#allocation2 + $0x18]] }
  0x1c   :  { %vm283_vm13 = vcmp.ge.f32.partialorder %v189_v0, %v74_v20  ;;  %v79_v24 = vstv %s215_s30  ;;  %vm63_vm14 = vmand %vm57_vm10, %vm62_vm12  ;;  %vm290_vm15 = vcmp.le.f32.partialorder %v189_v0, %v76_v23  ;;  %v81_v26 = vstv %s227_s3 }
  0x1d   :  { %vm80_vm0 = vcmp.ge.f32.partialorder %v198_v1, %v79_v24  ;;  %v85_v27 = vstv %s229_s4  ;;  %v66_v28 = vsel %vm63_vm14, %v64_v18, %v65_v19  ;;  %vm78_vm1 = vmand %vm283_vm13, %vm290_vm15  ;;  %vm82_vm2 = vcmp.le.f32.partialorder %v198_v1, %v81_v26 }
  0x1e   :  { %v86_v29 = vstv %s237_s5  ;;  %v95_v30 = vstv %s239_s6  ;;  %v67_v31 = vadd.f32 %v66_v28, %v46_v21  ;;  %vm83_vm3 = vmand %vm80_vm0, %vm82_vm2  ;;  %v97_v33 = vstv %s251_s7 }
  0x1f   :  { %vm305_vm4 = vcmp.ge.f32.partialorder %v189_v0, %v95_v30  ;;  %v100_v34 = vstv %s253_s8  ;;  %vm84_vm5 = vmand %vm78_vm1, %vm83_vm3  ;;  %vm98_vm6 = vcmp.le.f32.partialorder %v189_v0, %v97_v33  ;;  %v102_v35 = vstv %s266_s9 }
  0x20   :  { %vm101_vm7 = vcmp.ge.f32.partialorder %v198_v1, %v100_v34  ;;  %v87_v36 = vsel %vm84_vm5, %v85_v27, %v86_v29  ;;  %vm99_vm8 = vmand %vm305_vm4, %vm98_vm6  ;;  %vm103_vm9 = vcmp.le.f32.partialorder %v198_v1, %v102_v35  ;;  %v106_v37 = vstv %s268_s10 }
  0x21   :  { %v107_v38 = vstv %s278_s11  ;;  %v88_v39 = vadd.f32 %v87_v36, %v67_v31  ;;  %vm104_vm10 = vmand %vm101_vm7, %vm103_vm9  ;;  %v113_v43 = vstv %s145_s12 }
  0x22   :  { %vm105_vm11 = vmand %vm99_vm8, %vm104_vm10 }
  0x23   :  { %v108_v40 = vsel %vm105_vm11, %v106_v37, %v107_v38 }
  0x24   :  { %v109_v41 = vadd.f32 %v108_v40, %v88_v39 }
  0x26   :  { %147 = vlog2.f32 %v109_v41 }
  0x30   :  { %v148_v42 = vpop.eup %147 }
  0x31   :  { %v112_v44 = vmul.f32 0.6931472, %v148_v42 }
  0x33   :  { %v114_v45 = vadd.f32 %v113_v43, %v112_v44 }
  0x35   :  { %115 = vst [vmem:[%s324_s2] sm:$0x1] %v114_v45 }
  0x36   :  { %120 = vsyncpa [#allocation3], 1 }

</bundles_post_ra>
